<compile_context>
chip_gen: v5e
topology: v5e:2x2
jax: 0.10.0
libtpu: 0.0.40
codegen_flags: <defaults>
</compile_context>

<pallas_src>
import functools

import jax
import jax.numpy as jnp
from jax.experimental import pallas as pl
from jax.experimental.pallas import tpu as pltpu


def _round_up(x, m):
    return (x + m - 1) // m * m


def _knn_mask_kernel(sim_ref, out_ref, *, k, tr, nchunks):
    tb, n = sim_ref.shape
    neg_inf = jnp.float32(-jnp.inf)
    # Hoisted out of both loops (JAX does not CSE broadcast_in_dim).
    col = jax.lax.broadcasted_iota(jnp.int32, (tr, n), 1)

    @pl.loop(0, nchunks)
    def _(c):
        # Clamp the (possibly ragged) last chunk; overlapping rows are simply
        # recomputed - the per-row computation is idempotent.
        r0 = pl.multiple_of(jnp.minimum(c * tr, tb - tr),
                            8 if tr % 8 == 0 else 1)
        work0 = sim_ref[pl.ds(r0, tr), :].astype(jnp.float32)
        mask0 = jnp.full((tr, n), jnp.inf, dtype=jnp.float32)

        def body(_, carry):
            work, mask = carry
            # One XLU max-reduce + one XLU min-reduce per iteration; the first
            # (lowest-index) occurrence of the row max is knocked out.
            row_max = jnp.max(work, axis=1, keepdims=True)          # (tr, 1)
            is_max = work == row_max                                 # (tr, n)
            first_idx = jnp.min(jnp.where(is_max, col, n), axis=1,
                                keepdims=True)                       # (tr, 1)
            knock = col == first_idx
            return (jnp.where(knock, neg_inf, work),
                    jnp.where(knock, jnp.float32(0.0), mask))

        # k is a static Python int; full unroll only while it is cheap.
        _, mask = jax.lax.fori_loop(0, k, body, (work0, mask0),
                                    unroll=(True if k <= 8 else 2))
        out_ref[pl.ds(r0, tr), :] = mask.astype(out_ref.dtype)


def knn_mask(sim, k):
    """sim: (b, n) float array. Returns (b, n): 0 at top-k per row, +inf elsewhere."""
    b, n = sim.shape
    if k > n:
        raise ValueError(f"k={k} must be <= n={n}")
    if not jnp.issubdtype(sim.dtype, jnp.floating):
        raise ValueError("KNNMask expects a floating-point sim matrix")

    bytes_per_row = n * jnp.dtype(sim.dtype).itemsize

    # --- DMA block rows (tb): big enough to approach HBM roofline. ---
    if b < 8:
        tb = b  # full-dim row block (no sublane-multiple requirement)
    else:
        tb = min(512,
                 max(8, ((4 << 20) // max(bytes_per_row, 1)) // 8 * 8),
                 _round_up(b, 8))
        if b >= 64:
            # keep >= ~8 grid steps so v7x can shard the parallel batch axis
            tb = min(tb, max(8, _round_up(pl.cdiv(b, 8), 8)))

    # --- compute-chunk rows (tr): keep per-chunk live set within vregs. ---
    tr = 8
    while tr * 2 <= tb and (tr * 2) * n <= 8192:
        tr *= 2
    tr = min(tr, tb)
    nchunks = pl.cdiv(tb, tr)

    kernel = functools.partial(_knn_mask_kernel, k=k, tr=tr, nchunks=nchunks)
    out = pl.pallas_call(
        kernel,
        out_shape=jax.ShapeDtypeStruct((b, n), sim.dtype),
        grid=(pl.cdiv(b, tb),),
        in_specs=[pl.BlockSpec((tb, n), lambda i: (i, 0))],
        out_specs=pl.BlockSpec((tb, n), lambda i: (i, 0)),
        compiler_params=pltpu.CompilerParams(
            dimension_semantics=("parallel",)),
        cost_estimate=pl.CostEstimate(
            flops=6 * k * b * n,
            transcendentals=0,
            bytes_accessed=2 * b * bytes_per_row),
    )(sim)
    return out


if __name__ == "__main__":
    key = jax.random.PRNGKey(0)
    b, n, k = 8, 128, 5

    sim = jax.random.normal(key, (b, n), dtype=jnp.float32)

    mask = knn_mask(sim, k)
    mask = jax.block_until_ready(mask)

    # lightweight sanity check against a pure-JAX reference
    _, top_idx = jax.lax.top_k(sim, k)
    ref = jnp.full((b, n), jnp.inf, dtype=jnp.float32)
    ref = ref.at[jnp.arange(b)[:, None], top_idx].set(0.0)
    assert mask.shape == (b, n) and mask.dtype == sim.dtype
    assert bool(jnp.all(mask == ref))

    print("KERNEL_OK")
</pallas_src>

<mosaic_0001>
module attributes {stable_mosaic.version = 11 : i64} {
  func.func @_knn_mask_kernel(%arg0: i32, %arg1: memref<8x128xf32, #tpu.memory_space<vmem>>, %arg2: memref<8x128xf32, #tpu.memory_space<vmem>>) attributes {dimension_semantics = [#tpu.dimension_semantics<parallel>], iteration_bounds = array<i64: 1>, scalar_prefetch = 0 : i64, scratch_operands = 0 : i64, tpu.core_type = #tpu.core_type<tc>, window_params = [{transform_indices = @transform_0, window_bounds = array<i64: 8, 128>}, {transform_indices = @transform_1, window_bounds = array<i64: 8, 128>}]} {
    %0 = tpu.iota {dimensions = array<i32: 1>} : vector<8x128xi32>
    %cst = arith.constant 0xFF800000 : f32
    %c0_i32 = arith.constant 0 : i32
    %c1_i32 = arith.constant 1 : i32
    %1 = arith.muli %c0_i32, %c1_i32 : i32
    %c0_i32_0 = arith.constant 0 : i32
    %2 = arith.addi %c0_i32_0, %1 : i32
    %c8_i32 = arith.constant 8 : i32
    %3 = arith.muli %2, %c8_i32 : i32
    %c0_i32_1 = arith.constant 0 : i32
    %4 = arith.minsi %3, %c0_i32_1 : i32
    %5 = tpu.assume_multiple %4, 8 : i32
    %6 = arith.index_cast %5 : i32 to index
    %c0 = arith.constant 0 : index
    %7 = vector.load %arg1[%6, %c0] : memref<8x128xf32, #tpu.memory_space<vmem>>, vector<8x128xf32>
    %cst_2 = arith.constant 0x7F800000 : f32
    %8 = vector.broadcast %cst_2 : f32 to vector<8x128xf32>
    %c0_i32_3 = arith.constant 0 : i32
    %cst_4 = arith.constant dense<0xFF800000> : vector<8xf32>
    %9 = vector.multi_reduction <maximumf>, %7, %cst_4 [1] : vector<8x128xf32> to vector<8xf32>
    %10 = vector.shape_cast %9 : vector<8xf32> to vector<8x1xf32>
    %11 = vector.broadcast %10 : vector<8x1xf32> to vector<8x128xf32>
    %12 = arith.cmpf oeq, %7, %11 : vector<8x128xf32>
    %c128_i32 = arith.constant 128 : i32
    %13 = vector.broadcast %c128_i32 : i32 to vector<8x128xi32>
    %14 = arith.select %12, %0, %13 : vector<8x128xi1>, vector<8x128xi32>
    %cst_5 = arith.constant dense<2147483647> : vector<8xi32>
    %15 = vector.multi_reduction <minsi>, %14, %cst_5 [1] : vector<8x128xi32> to vector<8xi32>
    %16 = vector.shape_cast %15 : vector<8xi32> to vector<8x1xi32>
    %17 = vector.broadcast %16 : vector<8x1xi32> to vector<8x128xi32>
    %18 = arith.cmpi eq, %0, %17 : vector<8x128xi32>
    %19 = vector.broadcast %cst : f32 to vector<8x128xf32>
    %20 = arith.select %18, %19, %7 : vector<8x128xi1>, vector<8x128xf32>
    %cst_6 = arith.constant 0.000000e+00 : f32
    %21 = vector.broadcast %cst_6 : f32 to vector<8x128xf32>
    %22 = arith.select %18, %21, %8 : vector<8x128xi1>, vector<8x128xf32>
    %c1_i32_7 = arith.constant 1 : i32
    %cst_8 = arith.constant dense<0xFF800000> : vector<8xf32>
    %23 = vector.multi_reduction <maximumf>, %20, %cst_8 [1] : vector<8x128xf32> to vector<8xf32>
    %24 = vector.shape_cast %23 : vector<8xf32> to vector<8x1xf32>
    %25 = vector.broadcast %24 : vector<8x1xf32> to vector<8x128xf32>
    %26 = arith.cmpf oeq, %20, %25 : vector<8x128xf32>
    %c128_i32_9 = arith.constant 128 : i32
    %27 = vector.broadcast %c128_i32_9 : i32 to vector<8x128xi32>
    %28 = arith.select %26, %0, %27 : vector<8x128xi1>, vector<8x128xi32>
    %cst_10 = arith.constant dense<2147483647> : vector<8xi32>
    %29 = vector.multi_reduction <minsi>, %28, %cst_10 [1] : vector<8x128xi32> to vector<8xi32>
    %30 = vector.shape_cast %29 : vector<8xi32> to vector<8x1xi32>
    %31 = vector.broadcast %30 : vector<8x1xi32> to vector<8x128xi32>
    %32 = arith.cmpi eq, %0, %31 : vector<8x128xi32>
    %33 = vector.broadcast %cst : f32 to vector<8x128xf32>
    %34 = arith.select %32, %33, %20 : vector<8x128xi1>, vector<8x128xf32>
    %cst_11 = arith.constant 0.000000e+00 : f32
    %35 = vector.broadcast %cst_11 : f32 to vector<8x128xf32>
    %36 = arith.select %32, %35, %22 : vector<8x128xi1>, vector<8x128xf32>
    %c2_i32 = arith.constant 2 : i32
    %cst_12 = arith.constant dense<0xFF800000> : vector<8xf32>
    %37 = vector.multi_reduction <maximumf>, %34, %cst_12 [1] : vector<8x128xf32> to vector<8xf32>
    %38 = vector.shape_cast %37 : vector<8xf32> to vector<8x1xf32>
    %39 = vector.broadcast %38 : vector<8x1xf32> to vector<8x128xf32>
    %40 = arith.cmpf oeq, %34, %39 : vector<8x128xf32>
    %c128_i32_13 = arith.constant 128 : i32
    %41 = vector.broadcast %c128_i32_13 : i32 to vector<8x128xi32>
    %42 = arith.select %40, %0, %41 : vector<8x128xi1>, vector<8x128xi32>
    %cst_14 = arith.constant dense<2147483647> : vector<8xi32>
    %43 = vector.multi_reduction <minsi>, %42, %cst_14 [1] : vector<8x128xi32> to vector<8xi32>
    %44 = vector.shape_cast %43 : vector<8xi32> to vector<8x1xi32>
    %45 = vector.broadcast %44 : vector<8x1xi32> to vector<8x128xi32>
    %46 = arith.cmpi eq, %0, %45 : vector<8x128xi32>
    %47 = vector.broadcast %cst : f32 to vector<8x128xf32>
    %48 = arith.select %46, %47, %34 : vector<8x128xi1>, vector<8x128xf32>
    %cst_15 = arith.constant 0.000000e+00 : f32
    %49 = vector.broadcast %cst_15 : f32 to vector<8x128xf32>
    %50 = arith.select %46, %49, %36 : vector<8x128xi1>, vector<8x128xf32>
    %c3_i32 = arith.constant 3 : i32
    %cst_16 = arith.constant dense<0xFF800000> : vector<8xf32>
    %51 = vector.multi_reduction <maximumf>, %48, %cst_16 [1] : vector<8x128xf32> to vector<8xf32>
    %52 = vector.shape_cast %51 : vector<8xf32> to vector<8x1xf32>
    %53 = vector.broadcast %52 : vector<8x1xf32> to vector<8x128xf32>
    %54 = arith.cmpf oeq, %48, %53 : vector<8x128xf32>
    %c128_i32_17 = arith.constant 128 : i32
    %55 = vector.broadcast %c128_i32_17 : i32 to vector<8x128xi32>
    %56 = arith.select %54, %0, %55 : vector<8x128xi1>, vector<8x128xi32>
    %cst_18 = arith.constant dense<2147483647> : vector<8xi32>
    %57 = vector.multi_reduction <minsi>, %56, %cst_18 [1] : vector<8x128xi32> to vector<8xi32>
    %58 = vector.shape_cast %57 : vector<8xi32> to vector<8x1xi32>
    %59 = vector.broadcast %58 : vector<8x1xi32> to vector<8x128xi32>
    %60 = arith.cmpi eq, %0, %59 : vector<8x128xi32>
    %61 = vector.broadcast %cst : f32 to vector<8x128xf32>
    %62 = arith.select %60, %61, %48 : vector<8x128xi1>, vector<8x128xf32>
    %cst_19 = arith.constant 0.000000e+00 : f32
    %63 = vector.broadcast %cst_19 : f32 to vector<8x128xf32>
    %64 = arith.select %60, %63, %50 : vector<8x128xi1>, vector<8x128xf32>
    %c4_i32 = arith.constant 4 : i32
    %cst_20 = arith.constant dense<0xFF800000> : vector<8xf32>
    %65 = vector.multi_reduction <maximumf>, %62, %cst_20 [1] : vector<8x128xf32> to vector<8xf32>
    %66 = vector.shape_cast %65 : vector<8xf32> to vector<8x1xf32>
    %67 = vector.broadcast %66 : vector<8x1xf32> to vector<8x128xf32>
    %68 = arith.cmpf oeq, %62, %67 : vector<8x128xf32>
    %c128_i32_21 = arith.constant 128 : i32
    %69 = vector.broadcast %c128_i32_21 : i32 to vector<8x128xi32>
    %70 = arith.select %68, %0, %69 : vector<8x128xi1>, vector<8x128xi32>
    %cst_22 = arith.constant dense<2147483647> : vector<8xi32>
    %71 = vector.multi_reduction <minsi>, %70, %cst_22 [1] : vector<8x128xi32> to vector<8xi32>
    %72 = vector.shape_cast %71 : vector<8xi32> to vector<8x1xi32>
    %73 = vector.broadcast %72 : vector<8x1xi32> to vector<8x128xi32>
    %74 = arith.cmpi eq, %0, %73 : vector<8x128xi32>
    %75 = vector.broadcast %cst : f32 to vector<8x128xf32>
    %76 = arith.select %74, %75, %62 : vector<8x128xi1>, vector<8x128xf32>
    %cst_23 = arith.constant 0.000000e+00 : f32
    %77 = vector.broadcast %cst_23 : f32 to vector<8x128xf32>
    %78 = arith.select %74, %77, %64 : vector<8x128xi1>, vector<8x128xf32>
    %79 = arith.index_cast %5 : i32 to index
    %c0_24 = arith.constant 0 : index
    %80 = vector.load %arg2[%79, %c0_24] : memref<8x128xf32, #tpu.memory_space<vmem>>, vector<8x128xf32>
    tpu.vector_store %arg2[%79, %c0_24], %78 {strides = array<i32>} : memref<8x128xf32, #tpu.memory_space<vmem>>, vector<8x128xf32>,
    %c1_i32_25 = arith.constant 1 : i32
    return
  }
  func.func @transform_0(%arg0: i32) -> (i32, i32) {
    %c0_i32 = arith.constant 0 : i32
    %c0_i32_0 = arith.constant 0 : i32
    return %arg0, %c0_i32 : i32, i32
  }
  func.func @transform_1(%arg0: i32) -> (i32, i32) {
    %c0_i32 = arith.constant 0 : i32
    %c0_i32_0 = arith.constant 0 : i32
    return %arg0, %c0_i32 : i32, i32
  }
}

</mosaic_0001>

<bundles_post_ra>
// kernel: tpu_custom_call.1
= control target key start
LH: loop header
LB: loop body
LE: loop exit
PB: predicated region body
PF: predicated region fallthrough
CT: control target
= control target key end

     0   :  { %6 = vsyncpa [#allocation3], 0  ;;  %s238_s0 = inlined_call_operand.hbm [shape: f32[8,128], index: 0, kind: input, shape index: {}]   ;;  %s239_s1 = inlined_call_operand.hbm [shape: f32[8,128], index: 1, kind: output, shape index: {}]  }
   0x1   :  { %7 = vsyncpa [#allocation4], 0  ;;  %s13_s8 = sshll.u32 %s238_s0, 4  ;;  %s203_s9 = smov [#allocation2]   ;;  %s14_s8 = int_to_ptr.hbm [resolvable:$true] %s13_s8 }
   0x2   :  { %s15_s10 = sshll.u32 %s203_s9, 4  ;;  %s16_s10 = int_to_ptr.vmem [resolvable:$true] %s15_s10 }
   0x3   :  { %18 = dma.hbm_to_vmem [thread:$0]  %s14_s8, 128, %s16_s10, [#allocation3]  }
   0x4   :  { %199 = dma.done.wait [#allocation3], 128  }
   0x5   :  { %200 = vsyncadd [#allocation3], 4294967168  ;;  %v25_v0 = vld [vmem:[#allocation2] sm:$0xff]  ;;  %v23_v1 = vlaneseq  ;;  %v204_v30 = vmov inf   ;;  %s205_s0 = smov [#allocation5]   ;;  %s138_s14 = sshll.u32 %s239_s1, 4  ;;  %s139_s14 = int_to_ptr.hbm [resolvable:$true] %s138_s14 }
   0x6   :  { %26 = vmax.xlane.f32.xlu0 %v25_v0  ;;  %s136_s11 = sshll.u32 %s205_s0, 4  ;;  %s137_s11 = int_to_ptr.vmem [resolvable:$true] %s136_s11 }
   0x7   :  { %v219_v2 = vand.u32 127, %v23_v1 }
  0x79   :  { %v27_v3 = vpop.xlane.xlu0 %26 }
  0x7a   :  { %vm28_vm0 = vcmp.eq.f32.partialorder %v25_v0, %v27_v3 }
  0x7b   :  { %v29_v4 = vsel %vm28_vm0, %v219_v2, 128 }
  0x7c   :  { %v31_v5 = vshra.s32 %v29_v4, 16  ;;  %v30_v7 = vand.u32 65535, %v29_v4 }
  0x7e   :  { %v33_v6 = vcvt.s32.f32 %v31_v5  ;;  %v32_v9 = vcvt.s32.f32 %v30_v7 }
  0x80   :  { %34 = vmin.xlane.f32.xlu0 %v33_v6 }
  0xf3   :  { %v35_v8 = vpop.xlane.xlu0 %34 }
  0xf4   :  { %vm36_vm1 = vcmp.eq.f32.partialorder %v33_v6, %v35_v8  ;;  %v41_v11 = vcvt.f32.s32 %v35_v8 }
  0xf5   :  { %v37_v10 = vsel %vm36_vm1, %v32_v9, inf }
  0xf6   :  { %38 = vmin.xlane.f32.xlu1 %v37_v10  ;;  %v42_v13 = vshll.u32 %v41_v11, 16 }
 0x169   :  { %v39_v12 = vpop.xlane.xlu1 %38 }
 0x16a   :  { %v40_v14 = vcvt.f32.s32 %v39_v12 }
 0x16c   :  { %v43_v15 = vadd.s32 %v42_v13, %v40_v14 }
 0x16e   :  { %vm44_vm2 = vcmp.eq.s32.totalorder %v219_v2, %v43_v15 }
 0x16f   :  { %v45_v16 = vsel %vm44_vm2, -inf, %v25_v0  ;;  %v46_v31 = vsel %vm44_vm2, 0.0, %v204_v30 }
 0x170   :  { %47 = vmax.xlane.f32.xlu1 %v45_v16 }
 0x1e3   :  { %v48_v17 = vpop.xlane.xlu1 %47 }
 0x1e4   :  { %vm49_vm3 = vcmp.eq.f32.partialorder %v45_v16, %v48_v17 }
 0x1e5   :  { %v50_v18 = vsel %vm49_vm3, %v219_v2, 128 }
 0x1e6   :  { %v52_v19 = vshra.s32 %v50_v18, 16  ;;  %v51_v21 = vand.u32 65535, %v50_v18 }
 0x1e8   :  { %v54_v20 = vcvt.s32.f32 %v52_v19  ;;  %v53_v23 = vcvt.s32.f32 %v51_v21 }
 0x1ea   :  { %55 = vmin.xlane.f32.xlu2 %v54_v20 }
 0x25d   :  { %v56_v22 = vpop.xlane.xlu2 %55 }
 0x25e   :  { %vm57_vm4 = vcmp.eq.f32.partialorder %v54_v20, %v56_v22  ;;  %v62_v25 = vcvt.f32.s32 %v56_v22 }
 0x25f   :  { %v58_v24 = vsel %vm57_vm4, %v53_v23, inf }
 0x260   :  { %59 = vmin.xlane.f32.xlu2 %v58_v24  ;;  %v63_v27 = vshll.u32 %v62_v25, 16 }
 0x2d3   :  { %v60_v26 = vpop.xlane.xlu2 %59 }
 0x2d4   :  { %v61_v28 = vcvt.f32.s32 %v60_v26 }
 0x2d6   :  { %v64_v29 = vadd.s32 %v63_v27, %v61_v28 }
 0x2d8   :  { %vm65_vm5 = vcmp.eq.s32.totalorder %v219_v2, %v64_v29 }
 0x2d9   :  { %v66_v32 = vsel %vm65_vm5, -inf, %v45_v16  ;;  %v67_v33 = vsel %vm65_vm5, 0.0, %v46_v31 }
 0x2da   :  { %68 = vmax.xlane.f32.xlu0 %v66_v32 }
 0x34d   :  { %v69_v34 = vpop.xlane.xlu0 %68 }
 0x34e   :  { %vm70_vm6 = vcmp.eq.f32.partialorder %v66_v32, %v69_v34 }
 0x34f   :  { %v71_v35 = vsel %vm70_vm6, %v219_v2, 128 }
 0x350   :  { %v73_v36 = vshra.s32 %v71_v35, 16  ;;  %v72_v38 = vand.u32 65535, %v71_v35 }
 0x352   :  { %v75_v37 = vcvt.s32.f32 %v73_v36  ;;  %v74_v40 = vcvt.s32.f32 %v72_v38 }
 0x354   :  { %76 = vmin.xlane.f32.xlu1 %v75_v37 }
 0x3c7   :  { %v77_v39 = vpop.xlane.xlu1 %76 }
 0x3c8   :  { %vm78_vm7 = vcmp.eq.f32.partialorder %v75_v37, %v77_v39  ;;  %v83_v42 = vcvt.f32.s32 %v77_v39 }
 0x3c9   :  { %v79_v41 = vsel %vm78_vm7, %v74_v40, inf }
 0x3ca   :  { %80 = vmin.xlane.f32.xlu2 %v79_v41  ;;  %v84_v44 = vshll.u32 %v83_v42, 16 }
 0x43d   :  { %v81_v43 = vpop.xlane.xlu2 %80 }
 0x43e   :  { %v82_v45 = vcvt.f32.s32 %v81_v43 }
 0x440   :  { %v85_v46 = vadd.s32 %v84_v44, %v82_v45 }
 0x442   :  { %vm86_vm8 = vcmp.eq.s32.totalorder %v219_v2, %v85_v46 }
 0x443   :  { %v87_v47 = vsel %vm86_vm8, -inf, %v66_v32  ;;  %v88_v48 = vsel %vm86_vm8, 0.0, %v67_v33 }
 0x444   :  { %89 = vmax.xlane.f32.xlu0 %v87_v47 }
 0x4b7   :  { %v90_v49 = vpop.xlane.xlu0 %89 }
 0x4b8   :  { %vm91_vm9 = vcmp.eq.f32.partialorder %v87_v47, %v90_v49 }
 0x4b9   :  { %v92_v50 = vsel %vm91_vm9, %v219_v2, 128 }
 0x4ba   :  { %v94_v51 = vshra.s32 %v92_v50, 16  ;;  %v93_v53 = vand.u32 65535, %v92_v50 }
 0x4bc   :  { %v96_v52 = vcvt.s32.f32 %v94_v51  ;;  %v95_v55 = vcvt.s32.f32 %v93_v53 }
 0x4be   :  { %97 = vmin.xlane.f32.xlu1 %v96_v52 }
 0x531   :  { %v98_v54 = vpop.xlane.xlu1 %97 }
 0x532   :  { %vm99_vm10 = vcmp.eq.f32.partialorder %v96_v52, %v98_v54  ;;  %v104_v57 = vcvt.f32.s32 %v98_v54 }
 0x533   :  { %v100_v56 = vsel %vm99_vm10, %v95_v55, inf }
 0x534   :  { %101 = vmin.xlane.f32.xlu2 %v100_v56  ;;  %v105_v59 = vshll.u32 %v104_v57, 16 }
 0x5a7   :  { %v102_v58 = vpop.xlane.xlu2 %101 }
 0x5a8   :  { %v103_v60 = vcvt.f32.s32 %v102_v58 }
 0x5aa   :  { %v106_v61 = vadd.s32 %v105_v59, %v103_v60 }
 0x5ac   :  { %vm107_vm11 = vcmp.eq.s32.totalorder %v219_v2, %v106_v61 }
 0x5ad   :  { %v108_v62 = vsel %vm107_vm11, -inf, %v87_v47  ;;  %v109_v63 = vsel %vm107_vm11, 0.0, %v88_v48 }
 0x5ae   :  { %110 = vmax.xlane.f32.xlu0 %v108_v62 }
 0x621   :  { %v111_v0 = vpop.xlane.xlu0 %110 }
 0x622   :  { %vm112_vm12 = vcmp.eq.f32.partialorder %v108_v62, %v111_v0 }
 0x623   :  { %v113_v1 = vsel %vm112_vm12, %v219_v2, 128 }
 0x624   :  { %v115_v3 = vshra.s32 %v113_v1, 16  ;;  %v114_v5 = vand.u32 65535, %v113_v1 }
 0x626   :  { %v117_v4 = vcvt.s32.f32 %v115_v3  ;;  %v116_v7 = vcvt.s32.f32 %v114_v5 }
 0x628   :  { %118 = vmin.xlane.f32.xlu1 %v117_v4 }
 0x69b   :  { %v119_v6 = vpop.xlane.xlu1 %118 }
 0x69c   :  { %vm120_vm13 = vcmp.eq.f32.partialorder %v117_v4, %v119_v6  ;;  %v125_v9 = vcvt.f32.s32 %v119_v6 }
 0x69d   :  { %v121_v8 = vsel %vm120_vm13, %v116_v7, inf }
 0x69e   :  { %122 = vmin.xlane.f32.xlu2 %v121_v8  ;;  %v126_v11 = vshll.u32 %v125_v9, 16 }
 0x711   :  { %v123_v10 = vpop.xlane.xlu2 %122 }
 0x712   :  { %v124_v12 = vcvt.f32.s32 %v123_v10 }
 0x714   :  { %v127_v13 = vadd.s32 %v126_v11, %v124_v12 }
 0x716   :  { %vm128_vm14 = vcmp.eq.s32.totalorder %v219_v2, %v127_v13 }
 0x717   :  { %v129_v14 = vsel %vm128_vm14, 0.0, %v109_v63 }
 0x718   :  { %130 = vst [vmem:[#allocation5] sm:$0xff] %v129_v14 }
 0x719   :  { %141 = dma.vmem_to_hbm [thread:$0]  %s137_s11, 128, %s139_s14, [#allocation4]  }
 0x71a   :  { %201 = dma.done.wait [#allocation4], 128  }
 0x71b   :  { %202 = vsyncadd [#allocation4], 4294967168 }
 0x71c   :  { %146 = vsyncpa [#allocation3], 1 }
 0x71d   :  { %147 = vsyncpa [#allocation4], 1 }

</bundles_post_ra>
